<compile_context>
chip_gen: v6e
topology: v6e:2x2x1
jax: 0.10.0
libtpu: 0.0.40
codegen_flags: <defaults>
</compile_context>

<pallas_src>
import functools

import jax
import jax.numpy as jnp
from jax.experimental import pallas as pl
from jax.experimental.pallas import tpu as pltpu


# A conservative scoped-VMEM ceiling valid on v5e/v6e (128 MiB physical) and
# v7x (64 MiB physical).  Tiles below use only a few MiB.
_VMEM_LIMIT_BYTES = 48 * 1024 * 1024


def _round_up(v, m):
    return ((v + m - 1) // m) * m


def _pick_tile(n, candidates):
    """Largest candidate that divides n (n is always a multiple of 128)."""
    for c in candidates:
        if n % c == 0:
            return c
    return 128


def _pad2(a, rows, cols):
    return jnp.pad(a, ((0, rows - a.shape[0]), (0, cols - a.shape[1])))


def _pad1(a, rows):
    return jnp.pad(a, (0, rows - a.shape[0]))


# ----------------------------- Pallas kernels -----------------------------

def _feature_transform_kernel(x_ref, w_ref, o_ref):
    # XW tile = X_tile @ W   (W fully resident, bf16 operands, f32 acc)
    o_ref[...] = jnp.dot(
        x_ref[...], w_ref[...], preferred_element_type=jnp.float32
    ).astype(o_ref.dtype)


def _aggregate_kernel(a_ref, xw_ref, b_ref, o_ref, acc_ref, *, apply_relu):
    # out_tile = act(sum_k A[i,k] @ XW[k] + b)
    k = pl.program_id(1)

    @pl.when(k == 0)
    def _():
        acc_ref[...] = jnp.zeros_like(acc_ref)

    acc_ref[...] += jnp.dot(
        a_ref[...], xw_ref[...], preferred_element_type=jnp.float32)

    @pl.when(k == pl.num_programs(1) - 1)
    def _():
        out = acc_ref[...] + b_ref[...]          # f32 epilogue (v5e-friendly)
        if apply_relu:
            out = jnp.maximum(out, 0.0)
        o_ref[...] = out.astype(o_ref.dtype)


def _aggregate_transform_kernel(a_ref, xw_ref, b_ref, wn_ref, o_ref, acc_ref):
    # Fused layer-1 aggregation + layer-2 feature transform:
    #   out_tile = relu(A@XW1 + b1) @ W2      (h1 never touches HBM)
    k = pl.program_id(1)

    @pl.when(k == 0)
    def _():
        acc_ref[...] = jnp.zeros_like(acc_ref)

    acc_ref[...] += jnp.dot(
        a_ref[...], xw_ref[...], preferred_element_type=jnp.float32)

    @pl.when(k == pl.num_programs(1) - 1)
    def _():
        h = jnp.maximum(acc_ref[...] + b_ref[...], 0.0).astype(wn_ref.dtype)
        o_ref[...] = jnp.dot(
            h, wn_ref[...], preferred_element_type=jnp.float32
        ).astype(o_ref.dtype)


def _aggregate_classify_kernel(a_ref, xw_ref, b_ref, wc_ref, bc_ref,
                               o_ref, acc_ref):
    # Fused layer-2 aggregation + classifier: out_tile = relu(A@XW2 + b2)@Wc + bc
    k = pl.program_id(1)

    @pl.when(k == 0)
    def _():
        acc_ref[...] = jnp.zeros_like(acc_ref)

    acc_ref[...] += jnp.dot(
        a_ref[...], xw_ref[...], preferred_element_type=jnp.float32)

    @pl.when(k == pl.num_programs(1) - 1)
    def _():
        h = jnp.maximum(acc_ref[...] + b_ref[...], 0.0).astype(wc_ref.dtype)
        o_ref[...] = (
            jnp.dot(h, wc_ref[...], preferred_element_type=jnp.float32)
            + bc_ref[...]
        ).astype(o_ref.dtype)


# ------------------------------- wrappers ----------------------------------

def feature_transform(x, w, *, tm):
    """XW = X @ W, row-tiled; bf16 in / bf16 out (feeds the bf16 MXU path)."""
    n_pad, f_pad = x.shape
    d_pad = w.shape[1]
    return pl.pallas_call(
        _feature_transform_kernel,
        out_shape=jax.ShapeDtypeStruct((n_pad, d_pad), jnp.bfloat16),
        grid_spec=pltpu.PrefetchScalarGridSpec(
            num_scalar_prefetch=0,
            grid=(n_pad // tm,),
            in_specs=[
                pl.BlockSpec((tm, f_pad), lambda i: (i, 0)),
                pl.BlockSpec((f_pad, d_pad), lambda i: (0, 0)),
            ],
            out_specs=pl.BlockSpec((tm, d_pad), lambda i: (i, 0)),
        ),
        compiler_params=pltpu.CompilerParams(
            dimension_semantics=("parallel",),
            vmem_limit_bytes=_VMEM_LIMIT_BYTES),
    )(x, w)


def aggregate(a_hat, xw, b, *, apply_relu, tm, tk):
    """act(A_hat @ XW + b), tiled over (rows, reduction) with f32 accumulator."""
    n_pad = a_hat.shape[0]
    d_pad = xw.shape[1]
    b2d = b.reshape(1, d_pad).astype(jnp.float32)
    kernel = functools.partial(_aggregate_kernel, apply_relu=apply_relu)
    return pl.pallas_call(
        kernel,
        out_shape=jax.ShapeDtypeStruct((n_pad, d_pad), jnp.float32),
        grid_spec=pltpu.PrefetchScalarGridSpec(
            num_scalar_prefetch=0,
            grid=(n_pad // tm, n_pad // tk),
            in_specs=[
                pl.BlockSpec((tm, tk), lambda i, k: (i, k)),      # A_hat (bf16)
                pl.BlockSpec((tk, d_pad), lambda i, k: (k, 0)),   # XW (bf16)
                pl.BlockSpec((1, d_pad), lambda i, k: (0, 0)),    # bias (f32)
            ],
            out_specs=pl.BlockSpec((tm, d_pad), lambda i, k: (i, 0)),
            scratch_shapes=[pltpu.VMEM((tm, d_pad), jnp.float32)],
        ),
        compiler_params=pltpu.CompilerParams(
            dimension_semantics=("parallel", "arbitrary"),
            vmem_limit_bytes=_VMEM_LIMIT_BYTES),
    )(a_hat, xw, b2d)


def aggregate_transform(a_hat, xw, b, w_next, *, tm, tk):
    """relu(A_hat @ XW + b) @ W_next, next-layer lin fused into the epilogue."""
    n_pad = a_hat.shape[0]
    d_pad = xw.shape[1]
    d_out = w_next.shape[1]
    b2d = b.reshape(1, d_pad).astype(jnp.float32)
    return pl.pallas_call(
        _aggregate_transform_kernel,
        out_shape=jax.ShapeDtypeStruct((n_pad, d_out), jnp.bfloat16),
        grid_spec=pltpu.PrefetchScalarGridSpec(
            num_scalar_prefetch=0,
            grid=(n_pad // tm, n_pad // tk),
            in_specs=[
                pl.BlockSpec((tm, tk), lambda i, k: (i, k)),       # A_hat (bf16)
                pl.BlockSpec((tk, d_pad), lambda i, k: (k, 0)),    # XW1 (bf16)
                pl.BlockSpec((1, d_pad), lambda i, k: (0, 0)),     # b1 (f32)
                pl.BlockSpec((d_pad, d_out), lambda i, k: (0, 0)),  # W2 (bf16)
            ],
            out_specs=pl.BlockSpec((tm, d_out), lambda i, k: (i, 0)),
            scratch_shapes=[pltpu.VMEM((tm, d_pad), jnp.float32)],
        ),
        compiler_params=pltpu.CompilerParams(
            dimension_semantics=("parallel", "arbitrary"),
            vmem_limit_bytes=_VMEM_LIMIT_BYTES),
    )(a_hat, xw, b2d, w_next)


def aggregate_classify(a_hat, xw, b, wc, bc, *, tm, tk):
    """relu(A_hat @ XW + b) @ Wc + bc, classifier fused into the epilogue."""
    n_pad = a_hat.shape[0]
    d_pad = xw.shape[1]
    c_pad = wc.shape[1]
    b2d = b.reshape(1, d_pad).astype(jnp.float32)
    bc2d = bc.reshape(1, c_pad).astype(jnp.float32)
    return pl.pallas_call(
        _aggregate_classify_kernel,
        out_shape=jax.ShapeDtypeStruct((n_pad, c_pad), jnp.float32),
        grid_spec=pltpu.PrefetchScalarGridSpec(
            num_scalar_prefetch=0,
            grid=(n_pad // tm, n_pad // tk),
            in_specs=[
                pl.BlockSpec((tm, tk), lambda i, k: (i, k)),        # A_hat (bf16)
                pl.BlockSpec((tk, d_pad), lambda i, k: (k, 0)),     # XW2 (bf16)
                pl.BlockSpec((1, d_pad), lambda i, k: (0, 0)),      # b2 (f32)
                pl.BlockSpec((d_pad, c_pad), lambda i, k: (0, 0)),  # Wc (bf16)
                pl.BlockSpec((1, c_pad), lambda i, k: (0, 0)),      # bc (f32)
            ],
            out_specs=pl.BlockSpec((tm, c_pad), lambda i, k: (i, 0)),
            scratch_shapes=[pltpu.VMEM((tm, d_pad), jnp.float32)],
        ),
        compiler_params=pltpu.CompilerParams(
            dimension_semantics=("parallel", "arbitrary"),
            vmem_limit_bytes=_VMEM_LIMIT_BYTES),
    )(a_hat, xw, b2d, wc, bc2d)


# ------------------------- graph preprocessing (glue) ----------------------

def build_norm_adj(edge_index, edge_weight, num_nodes, n_pad):
    """Dense symmetrically-normalized adjacency with self-loops (PyG gcn_norm),
    zero-padded to (n_pad, n_pad) and stored in bf16.

    Degree is computed over the target index (in-degree), matching PyG gcn_norm
    when edge_index contains both directions of each undirected edge.
    """
    loop = jnp.arange(num_nodes, dtype=edge_index.dtype)
    row = jnp.concatenate([edge_index[0], loop])          # source
    col = jnp.concatenate([edge_index[1], loop])          # target
    w = jnp.concatenate(
        [edge_weight.astype(jnp.float32),
         jnp.ones((num_nodes,), dtype=jnp.float32)])
    deg = jnp.zeros((num_nodes,), dtype=jnp.float32).at[col].add(w)
    deg_inv_sqrt = jnp.where(deg > 0, jax.lax.rsqrt(deg), 0.0)
    norm = deg_inv_sqrt[row] * w * deg_inv_sqrt[col]
    # message passing: out[target] += norm * x[source]  =>  A[target, source]
    a_hat = jnp.zeros((n_pad, n_pad), dtype=jnp.float32).at[col, row].add(norm)
    return a_hat.astype(jnp.bfloat16)


# ------------------------------ full model ---------------------------------

def gcn_forward(params, x, edge_index, edge_weight, is_proxy=False):
    n = x.shape[0]
    n_feat, n_dims = params["w1"].shape
    n_clss = params["wc"].shape[1]

    # Padded sizes: feature dims lane-dense (mult. of 128), node dim tiled.
    f_pad = _round_up(n_feat, 128)
    d_pad = _round_up(n_dims, 128)
    c_pad = _round_up(n_clss, 128)
    n_pad = _round_up(n, 128)
    tm = _pick_tile(n_pad, (512, 256, 128))              # output-row tile
    tk = _pick_tile(n_pad, (2048, 1024, 512, 256, 128))  # reduction tile

    # Zero-pad inputs / parameters; MXU operands in bf16, biases stay f32.
    x_p = _pad2(x, n_pad, f_pad).astype(jnp.bfloat16)
    w1 = _pad2(params["w1"], f_pad, d_pad).astype(jnp.bfloat16)
    b1 = _pad1(params["b1"], d_pad).astype(jnp.float32)
    w2 = _pad2(params["w2"], d_pad, d_pad).astype(jnp.bfloat16)
    b2 = _pad1(params["b2"], d_pad).astype(jnp.float32)
    wc = _pad2(params["wc"], d_pad, c_pad).astype(jnp.bfloat16)
    bc = _pad1(params["bc"], c_pad).astype(jnp.float32)

    a_hat = build_norm_adj(edge_index, edge_weight, n, n_pad)  # bf16, dominant HBM stream

    # Layer 1 lin:            XW1 = X @ W1
    xw1 = feature_transform(x_p, w1, tm=tm)
    # Layer 1 agg + layer 2 lin (fused):  XW2 = relu(A@XW1 + b1) @ W2
    xw2 = aggregate_transform(a_hat, xw1, b1, w2, tm=tm, tk=tk)

    if is_proxy:
        # Layer 2 agg only:   h2 = A@XW2 + b2
        h2 = aggregate(a_hat, xw2, b2, apply_relu=False, tm=tm, tk=tk)
        return h2[:n, :n_dims]

    # Layer 2 agg + classifier (fused): out = relu(A@XW2 + b2) @ Wc + bc
    out = aggregate_classify(a_hat, xw2, b2, wc, bc, tm=tm, tk=tk)
    return out[:n, :n_clss]


def init_params(key, n_feat, n_dims, n_clss):
    k1, k2, k3, k4 = jax.random.split(key, 4)

    def glorot(k, shape):
        limit = jnp.sqrt(6.0 / (shape[0] + shape[1]))
        return jax.random.uniform(k, shape, jnp.float32, -limit, limit)

    return {
        "w1": glorot(k1, (n_feat, n_dims)),
        "b1": jnp.zeros((n_dims,), jnp.float32),
        "w2": glorot(k2, (n_dims, n_dims)),
        "b2": jnp.zeros((n_dims,), jnp.float32),
        "wc": glorot(k3, (n_dims, n_clss)),
        "bc": jax.random.uniform(k4, (n_clss,), jnp.float32, -0.1, 0.1),
    }


if __name__ == "__main__":
    N_FEAT, N_DIMS, N_CLSS = 16, 32, 8
    N_NODES, N_EDGES = 8, 12

    key = jax.random.PRNGKey(0)
    kx, ke, kw, kp = jax.random.split(key, 4)

    x = jax.random.normal(kx, (N_NODES, N_FEAT), dtype=jnp.float32)
    edge_index = jax.random.randint(ke, (2, N_EDGES), 0, N_NODES, dtype=jnp.int32)
    edge_weight = jax.random.uniform(kw, (N_EDGES,), jnp.float32, 0.5, 1.5)

    params = init_params(kp, N_FEAT, N_DIMS, N_CLSS)

    out = gcn_forward(params, x, edge_index, edge_weight)
    jax.block_until_ready(out)
    assert out.shape == (N_NODES, N_CLSS)

    # also exercise the is_proxy path
    proxy = gcn_forward(params, x, edge_index, edge_weight, is_proxy=True)
    jax.block_until_ready(proxy)
    assert proxy.shape == (N_NODES, N_DIMS)

    print("KERNEL_OK")
</pallas_src>

<mosaic_0001>
module attributes {stable_mosaic.version = 11 : i64} {
  func.func @_feature_transform_kernel(%arg0: i32, %arg1: memref<128x128xbf16, #tpu.memory_space<vmem>>, %arg2: memref<128x128xbf16, #tpu.memory_space<vmem>>, %arg3: memref<128x128xbf16, #tpu.memory_space<vmem>>) attributes {dimension_semantics = [#tpu.dimension_semantics<parallel>], iteration_bounds = array<i64: 1>, scalar_prefetch = 0 : i64, scratch_operands = 0 : i64, tpu.core_type = #tpu.core_type<tc>, window_params = [{transform_indices = @transform_0, window_bounds = array<i64: 128, 128>}, {pipeline_mode = #tpu.pipeline_mode<synchronous>, transform_indices = @transform_1, window_bounds = array<i64: 128, 128>}, {transform_indices = @transform_2, window_bounds = array<i64: 128, 128>}]} {
    %c0 = arith.constant 0 : index
    %c0_0 = arith.constant 0 : index
    %0 = vector.load %arg1[%c0, %c0_0] : memref<128x128xbf16, #tpu.memory_space<vmem>>, vector<128x128xbf16>
    %c0_1 = arith.constant 0 : index
    %c0_2 = arith.constant 0 : index
    %1 = vector.load %arg2[%c0_1, %c0_2] : memref<128x128xbf16, #tpu.memory_space<vmem>>, vector<128x128xbf16>
    %cst = arith.constant dense<0.000000e+00> : vector<128x128xf32>
    %2 = tpu.matmul %0, %1, %cst {dimension_numbers = #tpu.dot_dimension_numbers<[1], [0], [0], [1], [0, 0, 1, 1], [], []>} : vector<128x128xbf16>, vector<128x128xbf16>, vector<128x128xf32> -> vector<128x128xf32>
    %3 = arith.truncf %2 : vector<128x128xf32> to vector<128x128xbf16>
    %c0_3 = arith.constant 0 : index
    %c0_4 = arith.constant 0 : index
    %4 = vector.load %arg3[%c0_3, %c0_4] : memref<128x128xbf16, #tpu.memory_space<vmem>>, vector<128x128xbf16>
    tpu.vector_store %arg3[%c0_3, %c0_4], %3 {strides = array<i32>} : memref<128x128xbf16, #tpu.memory_space<vmem>>, vector<128x128xbf16>,
    return
  }
  func.func @transform_0(%arg0: i32) -> (i32, i32) {
    %c0_i32 = arith.constant 0 : i32
    %c0_i32_0 = arith.constant 0 : i32
    return %arg0, %c0_i32 : i32, i32
  }
  func.func @transform_1(%arg0: i32) -> (i32, i32) {
    %c0_i32 = arith.constant 0 : i32
    %c0_i32_0 = arith.constant 0 : i32
    %c0_i32_1 = arith.constant 0 : i32
    return %c0_i32, %c0_i32_0 : i32, i32
  }
  func.func @transform_2(%arg0: i32) -> (i32, i32) {
    %c0_i32 = arith.constant 0 : i32
    %c0_i32_0 = arith.constant 0 : i32
    return %arg0, %c0_i32 : i32, i32
  }
}

</mosaic_0001>

<bundles_post_ra>
// kernel: tpu_custom_call.1
= control target key start
LH: loop header
LB: loop body
LE: loop exit
PB: predicated region body
PF: predicated region fallthrough
CT: control target
= control target key end

     0   :  { %7 = vsyncpa [#allocation3], 0  ;;  %s648_s0 = inlined_call_operand.hbm [shape: bf16[128,128], index: 0, kind: input, shape index: {}]   ;;  %s649_s1 = inlined_call_operand.hbm [shape: bf16[128,128], index: 1, kind: input, shape index: {}]   ;;  %s650_s2 = inlined_call_operand.hbm [shape: bf16[128,128], index: 2, kind: output, shape index: {}]  }
   0x1   :  { %8 = vsyncpa [#allocation6], 0 }
   0x2   :  { %9 = vsyncpa [#allocation4], 0  ;;  %s610_s9 = smov [#allocation2]  }
   0x3   :  { %s15_s10 = sshll.u32 %s610_s9, 4  ;;  %s16_s10 = int_to_ptr.vmem [resolvable:$true] %s15_s10 }
   0x4   :  { %s552_s11 = scalar_lea.vmem %s16_s10, 1024  ;;  %p557_p1 = scmp.lt.s32.totalorder %s16_s10, %s16_s10 }
   0x5   :  { %p553_p0 = scmp.ne.s32.totalorder %s16_s10, %s552_s11  ;;  %p558_p2 = scmp.lt.s32.totalorder %s552_s11, %s552_s11 }
   0x7   :  { %p559_p3 = por %p558_p2, %p557_p1 }
   0x9   :  { %p560_p4 = pnand %p559_p3, %p553_p0 }
   0xb   :  { %563 = shalt.err (!%p560_p4)
}
   0xc   :  { %s611_s12 = smov 64   ;;  %s612_s13 = smov 4  }
   0xd   :  { %21 = dma.hbm_to_vmem [thread:$0]  %s648_s0, 1024, %s16_s10, [#allocation3], %s611_s12, %s611_s12, %s612_s13  }
   0xe   :  { %s613_s16 = smov [#allocation5]  }
   0xf   :  { %s27_s17 = sshll.u32 %s613_s16, 4  ;;  %s28_s17 = int_to_ptr.vmem [resolvable:$true] %s27_s17 }
  0x10   :  { %s572_s18 = scalar_lea.vmem %s28_s17, 1024  ;;  %p577_p6 = scmp.lt.s32.totalorder %s28_s17, %s28_s17 }
  0x11   :  { %p573_p5 = scmp.ne.s32.totalorder %s28_s17, %s572_s18  ;;  %p578_p7 = scmp.lt.s32.totalorder %s572_s18, %s572_s18 }
  0x13   :  { %p579_p8 = por %p578_p7, %p577_p6 }
  0x15   :  { %p580_p9 = pnand %p579_p8, %p573_p5 }
  0x17   :  { %583 = shalt.err (!%p580_p9)
}
  0x18   :  { %33 = dma.hbm_to_vmem [thread:$0]  %s649_s1, 1024, %s28_s17, [#allocation6], %s611_s12, %s611_s12, %s612_s13  }
  0x19   :  { %604 = dma.done.wait [#allocation3], 1024  }
  0x1a   :  { %605 = vsyncadd [#allocation3], 4294966272 }
  0x1b   :  { %606 = dma.done.wait [#allocation6], 1024  }
  0x1c   :  { %607 = vsyncadd [#allocation6], 4294966272  ;;  %v528_v0 = vld [vmem:[#allocation5 + $0x38] sm:$0xff]   ;;  %v529_v1 = vld [vmem:[#allocation5 + $0x30] sm:$0xff]   ;;  %s614_s0 = smov [#allocation7]  }
  0x1d   :  { %475 = vmatprep.subr.bf16.mxu0 %v528_v0  ;;  %507 = vmatprep.subr.bf16.mxu1 %v528_v0  ;;  %v530_v2 = vld [vmem:[#allocation5 + $0x28] sm:$0xff]   ;;  %v531_v3 = vld [vmem:[#allocation5 + $0x20] sm:$0xff]   ;;  %v532_v6 = vld [vmem:[#allocation5 + $0x18] sm:$0xff]   ;;  %s351_s1 = sshll.u32 %s614_s0, 4  ;;  %s352_s1 = int_to_ptr.vmem [resolvable:$true] %s351_s1 }
  0x1e   :  { %476 = vmatpush3.bf16.msra.mxu0 %v528_v0  ;;  %515 = vmatpush3.bf16.msra.mxu1 %v528_v0  ;;  %v536_v4 = vld [vmem:[#allocation2] sm:$0xff]   ;;  %v533_v7 = vld [vmem:[#allocation5 + $0x10] sm:$0xff]   ;;  %v534_v8 = vld [vmem:[#allocation5 + $0x8] sm:$0xff]   ;;  %s584_s21 = scalar_lea.vmem %s352_s1, 1024  ;;  %p589_p11 = scmp.lt.s32.totalorder %s352_s1, %s352_s1 }
  0x1f   :  { %477 = vmatprep.subr.bf16.mxu0 %v529_v1  ;;  %508 = vmatprep.subr.bf16.mxu1 %v529_v1  ;;  %v537_v5 = vld [vmem:[#allocation2 + $0x20] sm:$0xff]   ;;  %v538_v10 = vld [vmem:[#allocation2 + $0x8] sm:$0xff]   ;;  %v540_v12 = vld [vmem:[#allocation2 + $0x10] sm:$0xff]   ;;  %p585_p10 = scmp.ne.s32.totalorder %s352_s1, %s584_s21  ;;  %p590_p12 = scmp.lt.s32.totalorder %s584_s21, %s584_s21 }
  0x20   :  { %491 = vmatprep.mubr.bf16.mxu0 %v536_v4  ;;  %499 = vmatprep.mubr.bf16.mxu1 %v537_v5  ;;  %v535_v9 = vld [vmem:[#allocation5] sm:$0xff]   ;;  %v539_v11 = vld [vmem:[#allocation2 + $0x28] sm:$0xff]   ;;  %v541_v13 = vld [vmem:[#allocation2 + $0x30] sm:$0xff]  }
  0x21   :  { %v542_v14 = vld [vmem:[#allocation2 + $0x18] sm:$0xff]   ;;  %p591_p13 = por %p590_p12, %p589_p11 }
  0x22   :  { %478 = vmatpush3.bf16.msra.mxu0 %v529_v1  ;;  %516 = vmatpush3.bf16.msra.mxu1 %v529_v1  ;;  %v543_v15 = vld [vmem:[#allocation2 + $0x38] sm:$0xff]  }
  0x23   :  { %479 = vmatprep.subr.bf16.mxu0 %v530_v2  ;;  %509 = vmatprep.subr.bf16.mxu1 %v530_v2  ;;  %p592_p0 = pnand %p591_p13, %p585_p10 }
  0x26   :  { %480 = vmatpush3.bf16.msra.mxu0 %v530_v2  ;;  %517 = vmatpush3.bf16.msra.mxu1 %v530_v2 }
  0x27   :  { %481 = vmatprep.subr.bf16.mxu0 %v531_v3  ;;  %510 = vmatprep.subr.bf16.mxu1 %v531_v3 }
  0x2a   :  { %482 = vmatpush3.bf16.msra.mxu0 %v531_v3  ;;  %518 = vmatpush3.bf16.msra.mxu1 %v531_v3 }
  0x2b   :  { %483 = vmatprep.subr.bf16.mxu0 %v532_v6  ;;  %511 = vmatprep.subr.bf16.mxu1 %v532_v6 }
  0x2e   :  { %484 = vmatpush3.bf16.msra.mxu0 %v532_v6  ;;  %519 = vmatpush3.bf16.msra.mxu1 %v532_v6 }
  0x2f   :  { %485 = vmatprep.subr.bf16.mxu0 %v533_v7  ;;  %512 = vmatprep.subr.bf16.mxu1 %v533_v7 }
  0x32   :  { %486 = vmatpush3.bf16.msra.mxu0 %v533_v7  ;;  %520 = vmatpush3.bf16.msra.mxu1 %v533_v7 }
  0x33   :  { %487 = vmatprep.subr.bf16.mxu0 %v534_v8  ;;  %513 = vmatprep.subr.bf16.mxu1 %v534_v8 }
  0x36   :  { %488 = vmatpush3.bf16.msra.mxu0 %v534_v8  ;;  %521 = vmatpush3.bf16.msra.mxu1 %v534_v8 }
  0x37   :  { %489 = vmatprep.subr.bf16.mxu0 %v535_v9  ;;  %514 = vmatprep.subr.bf16.mxu1 %v535_v9 }
  0x3a   :  { %490 = vmatpush3.bf16.msra.mxu0 %v535_v9  ;;  %522 = vmatpush3.bf16.msra.mxu1 %v535_v9 }
  0x3d   :  { %492 = vmatmul.mubr.bf16.vlgmr.msra.gmra.mxu0 %v538_v10  ;;  %500 = vmatmul.mubr.bf16.vlgmr.msra.gmra.mxu1 %v539_v11 }
  0x3e   :  { %495 = vmatprep.mubr.bf16.mxu0 %v540_v12  ;;  %503 = vmatprep.mubr.bf16.mxu1 %v541_v13 }
  0x45   :  { %496 = vmatmul.mubr.bf16.gmra.mxu0 %v542_v14  ;;  %504 = vmatmul.mubr.bf16.gmra.mxu1 %v543_v15 }
  0xfd   :  { %v493_v16 = vpop.f32.mrf.mxu0  ;;  %v501_v17 = vpop.f32.mrf.mxu1 }
  0xff   :  { %v203_v18 = vpop.f32.mrf.mxu0  ;;  %v235_v19 = vpop.f32.mrf.mxu1 }
 0x101   :  { %v494_v20 = vpop.f32.mrf.mxu0  ;;  %v502_v21 = vpop.f32.mrf.mxu1 }
 0x102   :  { %v420_v22 = vpack.c.bf16 %v494_v20, %v493_v16  ;;  %v440_v23 = vpack.c.bf16 %v502_v21, %v501_v17 }
 0x103   :  { %v206_v24 = vpop.f32.mrf.mxu0  ;;  %v238_v25 = vpop.f32.mrf.mxu1 }
 0x104   :  { %452 = vst [vmem:[#allocation7 + $0x8] sm:$0xff] %v420_v22   ;;  %456 = vst [vmem:[#allocation7 + $0x28] sm:$0xff] %v440_v23   ;;  %v415_v26 = vpack.c.bf16 %v206_v24, %v203_v18  ;;  %v435_v27 = vpack.c.bf16 %v238_v25, %v235_v19 }
 0x105   :  { %v497_v28 = vpop.f32.mrf.mxu0  ;;  %v505_v29 = vpop.f32.mrf.mxu1 }
 0x106   :  { %416 = vst [vmem:[#allocation7] sm:$0xff] %v415_v26   ;;  %455 = vst [vmem:[#allocation7 + $0x20] sm:$0xff] %v435_v27  }
 0x107   :  { %v219_v30 = vpop.f32.mrf.mxu0  ;;  %v251_v31 = vpop.f32.mrf.mxu1 }
 0x109   :  { %v498_v32 = vpop.f32.mrf.mxu0  ;;  %v506_v33 = vpop.f32.mrf.mxu1 }
 0x10a   :  { %v430_v34 = vpack.c.bf16 %v498_v32, %v497_v28  ;;  %v450_v35 = vpack.c.bf16 %v506_v33, %v505_v29 }
 0x10b   :  { %v222_v36 = vpop.f32.mrf.mxu0  ;;  %v254_v37 = vpop.f32.mrf.mxu1 }
 0x10c   :  { %454 = vst [vmem:[#allocation7 + $0x18] sm:$0xff] %v430_v34   ;;  %458 = vst [vmem:[#allocation7 + $0x38] sm:$0xff] %v450_v35   ;;  %v425_v38 = vpack.c.bf16 %v222_v36, %v219_v30  ;;  %v445_v39 = vpack.c.bf16 %v254_v37, %v251_v31 }
 0x10e   :  { %453 = vst [vmem:[#allocation7 + $0x10] sm:$0xff] %v425_v38   ;;  %457 = vst [vmem:[#allocation7 + $0x30] sm:$0xff] %v445_v39  }
 0x10f   :  { %595 = shalt.err (!%p592_p0)
}
 0x110   :  { %357 = dma.vmem_to_hbm [thread:$0]  %s352_s1, 1024, %s650_s2, [#allocation4], %s611_s12, %s611_s12, %s612_s13  }
 0x111   :  { %608 = dma.done.wait [#allocation4], 1024  }
 0x112   :  { %609 = vsyncadd [#allocation4], 4294966272 }
 0x113   :  { %361 = vsyncpa [#allocation3], 1 }
 0x114   :  { %362 = vsyncpa [#allocation6], 1 }
 0x115   :  { %363 = vsyncpa [#allocation4], 1 }

</bundles_post_ra>
